<compile_context>
chip_gen: v6e
topology: v6e:2x2x1
jax: 0.10.0
libtpu: 0.0.40
codegen_flags: <defaults>
</compile_context>

<pallas_src>
import jax
import jax.numpy as jnp
from jax.experimental import pallas as pl
from jax.experimental.pallas import tpu as pltpu


def _gaussian_denoiser_kernel(t_ref, z_ref, mean_ref, mean_v_ref, v_ref, s_ref, ut_ref, out_ref):
    # t_ref:      VMEM [TN, 1]     per-sample diffusion times (column)
    # z_ref:      VMEM [TN, dim]   batch tile of flattened samples (f32 or bf16)
    # mean_ref:   VMEM [1, dim]    f32
    # mean_v_ref: VMEM [1, Dp]     mean @ Vh^T, precomputed in the wrapper (f32)
    # v_ref:      VMEM [dim, Dp]   Vh^T, rank-padded, pre-transposed (f32 or bf16)
    # s_ref:      VMEM [1, Dp]     rank-padded singular values (f32)
    # ut_ref:     VMEM [Dp, dim]   U^T, rank-padded, pre-transposed (f32 or bf16)
    # out_ref:    VMEM [TN, dim]   f32
    t = t_ref[...]                                       # (TN, 1)  f32
    s = s_ref[...]                                       # (1, Dp)  f32
    s_aug = s / (s + t * t)                              # (TN, Dp) broadcast on VPU (exact divide)

    # y = z @ Vh^T  -> (TN, Dp)   (MXU, f32 accumulate); mean projection subtracted afterwards
    y = jnp.dot(z_ref[...], v_ref[...], preferred_element_type=jnp.float32)
    y_scaled = (y - mean_v_ref[...]) * s_aug             # (TN, Dp)

    # out = mean + y_scaled @ U^T  -> (TN, dim)  (MXU, lane-dense output store)
    y_scaled = y_scaled.astype(ut_ref.dtype)             # no-op in f32 mode, cast in bf16 mode
    mv = jnp.dot(y_scaled, ut_ref[...], preferred_element_type=jnp.float32)
    out_ref[...] = mean_ref[...] + mv


def _const_spec(block_shape):
    """BlockSpec for a grid-constant operand: same block every step -> single-buffer it."""
    index_map = lambda n: (0, 0)
    try:
        return pl.BlockSpec(block_shape, index_map, pipeline_mode=pl.Buffered(1))
    except TypeError:
        # Older jax without pipeline_mode kwarg: fall back to default double-buffering.
        return pl.BlockSpec(block_shape, index_map)


def _pick_block_and_vmem(N, dim, d_pad, z_bytes):
    """Derive the row tile from a per-generation VMEM budget and an explicit vmem limit."""
    f32 = 4
    try:
        vmem_phys = int(pltpu.get_tpu_info().vmem_capacity_bytes)
    except Exception:
        vmem_phys = 64 << 20      # conservative fallback: v7x per-TensorCore VMEM
    budget = int(vmem_phys * 0.70)

    # Single-buffered, grid-constant residents: Vh^T, U^T (compute dtype) + mean, mean_v, S (f32).
    const_bytes = 2 * dim * d_pad * z_bytes + (dim + 2 * d_pad) * f32
    # Double-buffered streaming cost per batch row: z in, out (f32), t column (lane-padded to 128).
    per_row = 2 * (dim * z_bytes + dim * f32 + 128 * f32)

    avail = max(budget - const_bytes, per_row * 8)
    block_n = avail // per_row
    block_n = max(8, min(1024, (block_n // 8) * 8))       # sublane-aligned, capped at 1024 rows
    block_n = min(block_n, max(8, ((N + 7) // 8) * 8))    # never wider than the (padded) batch

    required = const_bytes + block_n * per_row
    vmem_limit = int(min(vmem_phys, max(required + required // 4, 32 << 20)))
    return int(block_n), vmem_limit


def gaussian_denoiser(z, t, mean, U, S, Vh, *, block_n=None, use_bf16=False):
    """z: [N, C, H, W] f32, t: [N] f32, mean: [1, dim], U: [1, dim, D], S: [1, D], Vh: [1, D, dim]."""
    N, C, H, W = z.shape
    dim = C * H * W
    D = S.shape[-1]
    d_pad = ((D + 127) // 128) * 128                      # lane-dense, full-width MXU contraction

    compute_dtype = jnp.bfloat16 if use_bf16 else jnp.float32
    z_bytes = 2 if use_bf16 else 4

    auto_block_n, vmem_limit = _pick_block_and_vmem(N, dim, d_pad, z_bytes)
    if block_n is None:
        block_n = auto_block_n
    block_n = max(8, (int(block_n) // 8) * 8)
    num_tiles = pl.cdiv(N, block_n)
    n_pad = num_tiles * block_n

    z2 = z.reshape(N, dim).astype(compute_dtype)
    t2 = t.reshape(N, 1).astype(jnp.float32)
    if n_pad != N:
        z2 = jnp.pad(z2, ((0, n_pad - N), (0, 0)))
        # pad t with 1.0 so s_aug stays finite for the dummy rows
        t2 = jnp.pad(t2, ((0, n_pad - N), (0, 0)), constant_values=1.0)

    mean2 = mean.reshape(1, dim).astype(jnp.float32)

    # Rank padding: S padded with 1.0 (keeps s_aug finite), U / Vh padded columns are exactly 0,
    # so the padded lanes contribute exactly 0 to the output.
    S2 = jnp.pad(S.reshape(1, D).astype(jnp.float32), ((0, 0), (0, d_pad - D)), constant_values=1.0)
    # One-time XLA transposes (outside the hot loop) so both in-kernel matmul RHS are lane-dense.
    V2f = jnp.pad(jnp.transpose(Vh.reshape(D, dim)).astype(jnp.float32),
                  ((0, 0), (0, d_pad - D)))                                   # (dim, Dp) = Vh^T
    UT2f = jnp.pad(jnp.transpose(U.reshape(dim, D)).astype(jnp.float32),
                   ((0, d_pad - D), (0, 0)))                                  # (Dp, dim) = U^T
    mean_v = (mean2 @ V2f).reshape(1, d_pad)                                  # hoisted mean @ Vh^T
    V2 = V2f.astype(compute_dtype)
    UT2 = UT2f.astype(compute_dtype)

    out_flat = pl.pallas_call(
        _gaussian_denoiser_kernel,
        out_shape=jax.ShapeDtypeStruct((n_pad, dim), jnp.float32),
        grid_spec=pl.GridSpec(
            grid=(num_tiles,),
            in_specs=[
                pl.BlockSpec((block_n, 1), lambda n: (n, 0)),      # t  (per-tile column)
                pl.BlockSpec((block_n, dim), lambda n: (n, 0)),    # z  (per-tile rows)
                _const_spec((1, dim)),                             # mean       (constant)
                _const_spec((1, d_pad)),                           # mean @ Vh^T (constant)
                _const_spec((dim, d_pad)),                         # Vh^T       (constant)
                _const_spec((1, d_pad)),                           # S          (constant)
                _const_spec((d_pad, dim)),                         # U^T        (constant)
            ],
            out_specs=pl.BlockSpec((block_n, dim), lambda n: (n, 0)),
        ),
        compiler_params=pltpu.CompilerParams(
            # Tiles are fully independent -> shard across TensorCores on v7x.
            dimension_semantics=("parallel",),
            vmem_limit_bytes=vmem_limit,
        ),
    )(t2, z2, mean2, mean_v, V2, S2, UT2)

    return out_flat[:N].reshape(N, C, H, W)


def gaussian_denoiser_ref(z, t, mean, U, S, Vh):
    """Pure-JAX reference mirroring the PyTorch forward (explicit dim x dim cov)."""
    N = z.shape[0]
    zf = z.reshape(N, -1)
    dim = zf.shape[-1]
    s_aug = S[0][None, :] / (S[0][None, :] + (t[:, None] ** 2))        # (N, D)
    scaled_u = U[0][None, :, :] * s_aug[:, None, :]                    # (N, dim, D)
    cov = jnp.einsum('nid,dj->nij', scaled_u, Vh[0])                   # (N, dim, dim)
    diff = zf - mean.reshape(1, dim)                                   # (N, dim)
    out = mean.reshape(1, dim) + jnp.einsum('nij,nj->ni', cov, diff)   # (N, dim)
    return out.reshape(z.shape)


if __name__ == "__main__":
    # Small shapes consistent with the module: batch=2, channels=4, spatial=16.
    N, C, H, W = 2, 4, 16, 16
    dim = C * H * W     # 1024
    D = 64              # rank (GaussianDenoiser(rank=64)); padded to 128 inside the wrapper

    key = jax.random.PRNGKey(0)
    k_z, k_t, k_mean, k_u, k_s, k_vh = jax.random.split(key, 6)

    z = jax.random.normal(k_z, (N, C, H, W), dtype=jnp.float32)
    t = jax.random.uniform(k_t, (N,), dtype=jnp.float32, minval=0.1, maxval=2.0)

    # Deterministic synthetic parameters with the __init__-implied shapes
    # (in the real module these come from the dataset-covariance SVD).
    mean = jax.random.normal(k_mean, (1, dim), dtype=jnp.float32) * 0.1
    U = jax.random.normal(k_u, (1, dim, D), dtype=jnp.float32) / jnp.sqrt(dim)
    S = jax.random.uniform(k_s, (1, D), dtype=jnp.float32, minval=0.05, maxval=1.0)
    Vh = jax.random.normal(k_vh, (1, D, dim), dtype=jnp.float32) / jnp.sqrt(dim)

    out = gaussian_denoiser(z, t, mean, U, S, Vh)
    out = jax.block_until_ready(out)

    ref = gaussian_denoiser_ref(z, t, mean, U, S, Vh)
    assert out.shape == z.shape and out.dtype == jnp.float32
    assert jnp.allclose(out, ref, rtol=1e-4, atol=1e-4), "mismatch vs reference"

    print("KERNEL_OK")
</pallas_src>

<mosaic_0001>
module attributes {stable_mosaic.version = 11 : i64} {
  func.func @_gaussian_denoiser_kernel(%arg0: i32, %arg1: memref<8x1xf32, #tpu.memory_space<vmem>>, %arg2: memref<8x1024xf32, #tpu.memory_space<vmem>>, %arg3: memref<1x1024xf32, #tpu.memory_space<vmem>>, %arg4: memref<1x128xf32, #tpu.memory_space<vmem>>, %arg5: memref<1024x128xf32, #tpu.memory_space<vmem>>, %arg6: memref<1x128xf32, #tpu.memory_space<vmem>>, %arg7: memref<128x1024xf32, #tpu.memory_space<vmem>>, %arg8: memref<8x1024xf32, #tpu.memory_space<vmem>>) attributes {dimension_semantics = [#tpu.dimension_semantics<parallel>], iteration_bounds = array<i64: 1>, scalar_prefetch = 0 : i64, scratch_operands = 0 : i64, tpu.core_type = #tpu.core_type<tc>, window_params = [{transform_indices = @transform_0, window_bounds = array<i64: 8, 1>}, {transform_indices = @transform_1, window_bounds = array<i64: 8, 1024>}, {pipeline_mode = #tpu.pipeline_mode<synchronous>, transform_indices = @transform_2, window_bounds = array<i64: 1, 1024>}, {pipeline_mode = #tpu.pipeline_mode<synchronous>, transform_indices = @transform_3, window_bounds = array<i64: 1, 128>}, {pipeline_mode = #tpu.pipeline_mode<synchronous>, transform_indices = @transform_4, window_bounds = array<i64: 1024, 128>}, {pipeline_mode = #tpu.pipeline_mode<synchronous>, transform_indices = @transform_5, window_bounds = array<i64: 1, 128>}, {pipeline_mode = #tpu.pipeline_mode<synchronous>, transform_indices = @transform_6, window_bounds = array<i64: 128, 1024>}, {transform_indices = @transform_7, window_bounds = array<i64: 8, 1024>}]} {
    %c0 = arith.constant 0 : index
    %c0_0 = arith.constant 0 : index
    %0 = vector.load %arg1[%c0, %c0_0] : memref<8x1xf32, #tpu.memory_space<vmem>>, vector<8x1xf32>
    %c0_1 = arith.constant 0 : index
    %c0_2 = arith.constant 0 : index
    %1 = vector.load %arg6[%c0_1, %c0_2] : memref<1x128xf32, #tpu.memory_space<vmem>>, vector<1x128xf32>
    %2 = arith.mulf %0, %0 : vector<8x1xf32>
    %3 = vector.broadcast %1 : vector<1x128xf32> to vector<8x128xf32>
    %4 = vector.broadcast %2 : vector<8x1xf32> to vector<8x128xf32>
    %5 = arith.addf %3, %4 : vector<8x128xf32>
    %6 = vector.broadcast %1 : vector<1x128xf32> to vector<8x128xf32>
    %7 = arith.divf %6, %5 : vector<8x128xf32>
    %c0_3 = arith.constant 0 : index
    %c0_4 = arith.constant 0 : index
    %8 = vector.load %arg2[%c0_3, %c0_4] : memref<8x1024xf32, #tpu.memory_space<vmem>>, vector<8x1024xf32>
    %c0_5 = arith.constant 0 : index
    %c0_6 = arith.constant 0 : index
    %9 = vector.load %arg5[%c0_5, %c0_6] : memref<1024x128xf32, #tpu.memory_space<vmem>>, vector<1024x128xf32>
    %cst = arith.constant dense<0.000000e+00> : vector<8x128xf32>
    %10 = tpu.matmul %8, %9, %cst {dimension_numbers = #tpu.dot_dimension_numbers<[1], [0], [0], [1], [0, 0, 1, 1], [], []>} : vector<8x1024xf32>, vector<1024x128xf32>, vector<8x128xf32> -> vector<8x128xf32>
    %c0_7 = arith.constant 0 : index
    %c0_8 = arith.constant 0 : index
    %11 = vector.load %arg4[%c0_7, %c0_8] : memref<1x128xf32, #tpu.memory_space<vmem>>, vector<1x128xf32>
    %12 = vector.broadcast %11 : vector<1x128xf32> to vector<8x128xf32>
    %13 = arith.subf %10, %12 : vector<8x128xf32>
    %14 = arith.mulf %13, %7 : vector<8x128xf32>
    %c0_9 = arith.constant 0 : index
    %c0_10 = arith.constant 0 : index
    %15 = vector.load %arg7[%c0_9, %c0_10] : memref<128x1024xf32, #tpu.memory_space<vmem>>, vector<128x1024xf32>
    %cst_11 = arith.constant dense<0.000000e+00> : vector<8x1024xf32>
    %16 = tpu.matmul %14, %15, %cst_11 {dimension_numbers = #tpu.dot_dimension_numbers<[1], [0], [0], [1], [0, 0, 1, 1], [], []>} : vector<8x128xf32>, vector<128x1024xf32>, vector<8x1024xf32> -> vector<8x1024xf32>
    %c0_12 = arith.constant 0 : index
    %c0_13 = arith.constant 0 : index
    %17 = vector.load %arg3[%c0_12, %c0_13] : memref<1x1024xf32, #tpu.memory_space<vmem>>, vector<1x1024xf32>
    %18 = vector.broadcast %17 : vector<1x1024xf32> to vector<8x1024xf32>
    %19 = arith.addf %18, %16 : vector<8x1024xf32>
    %c0_14 = arith.constant 0 : index
    %c0_15 = arith.constant 0 : index
    %20 = vector.load %arg8[%c0_14, %c0_15] : memref<8x1024xf32, #tpu.memory_space<vmem>>, vector<8x1024xf32>
    tpu.vector_store %arg8[%c0_14, %c0_15], %19 {strides = array<i32>} : memref<8x1024xf32, #tpu.memory_space<vmem>>, vector<8x1024xf32>,
    return
  }
  func.func @transform_0(%arg0: i32) -> (i32, i32) {
    %c0_i32 = arith.constant 0 : i32
    %c0_i32_0 = arith.constant 0 : i32
    return %arg0, %c0_i32 : i32, i32
  }
  func.func @transform_1(%arg0: i32) -> (i32, i32) {
    %c0_i32 = arith.constant 0 : i32
    %c0_i32_0 = arith.constant 0 : i32
    return %arg0, %c0_i32 : i32, i32
  }
  func.func @transform_2(%arg0: i32) -> (i32, i32) {
    %c0_i32 = arith.constant 0 : i32
    %c0_i32_0 = arith.constant 0 : i32
    %c0_i32_1 = arith.constant 0 : i32
    return %c0_i32, %c0_i32_0 : i32, i32
  }
  func.func @transform_3(%arg0: i32) -> (i32, i32) {
    %c0_i32 = arith.constant 0 : i32
    %c0_i32_0 = arith.constant 0 : i32
    %c0_i32_1 = arith.constant 0 : i32
    return %c0_i32, %c0_i32_0 : i32, i32
  }
  func.func @transform_4(%arg0: i32) -> (i32, i32) {
    %c0_i32 = arith.constant 0 : i32
    %c0_i32_0 = arith.constant 0 : i32
    %c0_i32_1 = arith.constant 0 : i32
    return %c0_i32, %c0_i32_0 : i32, i32
  }
  func.func @transform_5(%arg0: i32) -> (i32, i32) {
    %c0_i32 = arith.constant 0 : i32
    %c0_i32_0 = arith.constant 0 : i32
    %c0_i32_1 = arith.constant 0 : i32
    return %c0_i32, %c0_i32_0 : i32, i32
  }
  func.func @transform_6(%arg0: i32) -> (i32, i32) {
    %c0_i32 = arith.constant 0 : i32
    %c0_i32_0 = arith.constant 0 : i32
    %c0_i32_1 = arith.constant 0 : i32
    return %c0_i32, %c0_i32_0 : i32, i32
  }
  func.func @transform_7(%arg0: i32) -> (i32, i32) {
    %c0_i32 = arith.constant 0 : i32
    %c0_i32_0 = arith.constant 0 : i32
    return %arg0, %c0_i32 : i32, i32
  }
}

</mosaic_0001>

<bundles_post_ra>
// kernel: tpu_custom_call.1
= control target key start
LH: loop header
LB: loop body
LE: loop exit
PB: predicated region body
PF: predicated region fallthrough
CT: control target
= control target key end

     0   :  { %12 = vsyncpa [#allocation3], 0  ;;  %s1319_s0 = inlined_call_operand.vmem [shape: f32[8,1], index: 0, kind: input, shape index: {}]   ;;  %s1320_s1 = inlined_call_operand.hbm [shape: f32[8,1024], index: 1, kind: input, shape index: {}]   ;;  %s1321_s2 = inlined_call_operand.vmem [shape: f32[1,1024], index: 2, kind: input, shape index: {}]   ;;  %s1322_s3 = inlined_call_operand.vmem [shape: f32[1,128], index: 3, kind: input, shape index: {}]   ;;  %s1323_s4 = inlined_call_operand.hbm [shape: f32[1024,128], index: 4, kind: input, shape index: {}]   ;;  %s1324_s5 = inlined_call_operand.vmem [shape: f32[1,128], index: 5, kind: input, shape index: {}]   ;;  %s1325_s6 = inlined_call_operand.hbm [shape: f32[128,1024], index: 6, kind: input, shape index: {}]   ;;  %s1326_s7 = inlined_call_operand.hbm [shape: f32[8,1024], index: 7, kind: output, shape index: {}]  }
   0x1   :  { %13 = vsyncpa [#allocation6], 0 }
   0x2   :  { %14 = vsyncpa [#allocation4], 0  ;;  %s1235_s24 = smov [#allocation5]  }
   0x3   :  { %s36_s25 = sshll.u32 %s1235_s24, 4  ;;  %s37_s25 = int_to_ptr.vmem [resolvable:$true] %s36_s25 }
   0x4   :  { %s1157_s26 = scalar_lea.vmem %s37_s25, 16384  ;;  %p1162_p1 = scmp.lt.s32.totalorder %s37_s25, %s37_s25 }
   0x5   :  { %p1158_p0 = scmp.ne.s32.totalorder %s37_s25, %s1157_s26  ;;  %p1163_p2 = scmp.lt.s32.totalorder %s1157_s26, %s1157_s26 }
   0x7   :  { %p1164_p3 = por %p1163_p2, %p1162_p1 }
   0x9   :  { %p1165_p4 = pnand %p1164_p3, %p1158_p0 }
   0xb   :  { %1168 = shalt.err (!%p1165_p4)
}
   0xc   :  { %s1236_s27 = smov 128   ;;  %s1237_s28 = smov 8  }
   0xd   :  { %42 = dma.hbm_to_vmem [thread:$0]  %s1323_s4, 16384, %s37_s25, [#allocation6], %s1236_s27, %s1236_s27, %s1237_s28  }
   0xe   :  { %s1238_s8 = smov [#allocation2]   ;;  %s1239_s10 = smov [#allocation7]  }
   0xf   :  { %s23_s9 = sshll.u32 %s1238_s8, 4  ;;  %s50_s11 = sshll.u32 %s1239_s10, 4  ;;  %s24_s9 = int_to_ptr.vmem [resolvable:$true] %s23_s9  ;;  %s51_s11 = int_to_ptr.vmem [resolvable:$true] %s50_s11 }
  0x10   :  { %s1177_s12 = scalar_lea.vmem %s24_s9, 1024  ;;  %p1182_p6 = scmp.lt.s32.totalorder %s24_s9, %s24_s9 }
  0x11   :  { %p1178_p5 = scmp.ne.s32.totalorder %s24_s9, %s1177_s12  ;;  %p1183_p7 = scmp.lt.s32.totalorder %s1177_s12, %s1177_s12 }
  0x13   :  { %p1184_p8 = por %p1183_p7, %p1182_p6 }
  0x15   :  { %p1185_p9 = pnand %p1184_p8, %p1178_p5 }
  0x17   :  { %1188 = shalt.err (!%p1185_p9)
}
  0x18   :  { %26 = dma.hbm_to_vmem [thread:$0]  %s1320_s1, 1024, %s24_s9, [#allocation3]  }
  0x19   :  { %s1197_s15 = scalar_lea.vmem %s51_s11, 16384  ;;  %p1202_p11 = scmp.lt.s32.totalorder %s51_s11, %s51_s11 }
  0x1a   :  { %p1198_p10 = scmp.ne.s32.totalorder %s51_s11, %s1197_s15  ;;  %p1203_p12 = scmp.lt.s32.totalorder %s1197_s15, %s1197_s15 }
  0x1c   :  { %p1204_p13 = por %p1203_p12, %p1202_p11 }
  0x1e   :  { %p1205_p0 = pnand %p1204_p13, %p1198_p10 }
  0x20   :  { %1208 = shalt.err (!%p1205_p0)
}
  0x21   :  { %s1240_s4 = smov 1024   ;;  %s1241_s16 = smov 64  }
  0x22   :  { %56 = dma.hbm_to_vmem [thread:$0]  %s1325_s6, 16384, %s51_s11, [#allocation6], %s1240_s4, %s1240_s4, %s1241_s16  }
  0x23   :  { %1229 = dma.done.wait [#allocation3], 1024  }
  0x24   :  { %1230 = vsyncadd [#allocation3], 4294966272 }
  0x25   :  { %1231 = dma.done.wait [#allocation6], 32768  }
  0x26   :  { %1232 = vsyncadd [#allocation6], 4294934528  ;;  %v1242_v0 = vmov 0   ;;  %v122_v1 = vld [vmem:[#allocation5 + $0xf8] sm:$0xff]  ;;  %v121_v5 = vld [vmem:[#allocation5 + $0xf0] sm:$0xff] }
  0x27   :  { %1146 = vset.pattern.permute.xlu0 %v1242_v0  ;;  %v154_v2 = vld [vmem:[#allocation5 + $0x1f8] sm:$0xff]  ;;  %996 = vmatprep.subr.mxu0 %v122_v1  ;;  %v153_v6 = vld [vmem:[#allocation5 + $0x1f0] sm:$0xff]  ;;  %v120_v9 = vld [vmem:[#allocation5 + $0xe8] sm:$0xff] }
  0x28   :  { %v106_v3 = vld [vmem:[#allocation5 + $0x78] sm:$0xff]  ;;  %1031 = vmatprep.subr.mxu1 %v154_v2  ;;  %v105_v7 = vld [vmem:[#allocation5 + $0x70] sm:$0xff]  ;;  %v152_v10 = vld [vmem:[#allocation5 + $0x1e8] sm:$0xff] }
  0x29   :  { %v138_v4 = vld [vmem:[#allocation5 + $0x178] sm:$0xff]  ;;  %997 = vmatpush3.msra.mxu0 %v106_v3  ;;  %v137_v8 = vld [vmem:[#allocation5 + $0x170] sm:$0xff]  ;;  %v104_v11 = vld [vmem:[#allocation5 + $0x68] sm:$0xff] }
  0x2a   :  { %1032 = vmatpush3.msra.mxu1 %v138_v4  ;;  %998 = vmatprep.subr.mxu0 %v121_v5  ;;  %v136_v12 = vld [vmem:[#allocation5 + $0x168] sm:$0xff]  ;;  %v119_v13 = vld [vmem:[#allocation5 + $0xe0] sm:$0xff]  ;;  %v118_v17 = vld [vmem:[#allocation5 + $0xd8] sm:$0xff] }
  0x2b   :  { %1033 = vmatprep.subr.mxu1 %v153_v6  ;;  %999 = vmatpush3.msra.mxu0 %v105_v7  ;;  %v151_v14 = vld [vmem:[#allocation5 + $0x1e0] sm:$0xff]  ;;  %v150_v18 = vld [vmem:[#allocation5 + $0x1d8] sm:$0xff]  ;;  %v117_v21 = vld [vmem:[#allocation5 + $0xd0] sm:$0xff] }
  0x2c   :  { %1034 = vmatpush3.msra.mxu1 %v137_v8  ;;  %1000 = vmatprep.subr.mxu0 %v120_v9  ;;  %v103_v15 = vld [vmem:[#allocation5 + $0x60] sm:$0xff]  ;;  %v102_v19 = vld [vmem:[#allocation5 + $0x58] sm:$0xff]  ;;  %v149_v22 = vld [vmem:[#allocation5 + $0x1d0] sm:$0xff] }
  0x2d   :  { %1035 = vmatprep.subr.mxu1 %v152_v10  ;;  %v135_v16 = vld [vmem:[#allocation5 + $0x160] sm:$0xff]  ;;  %1001 = vmatpush3.msra.mxu0 %v104_v11  ;;  %v134_v20 = vld [vmem:[#allocation5 + $0x158] sm:$0xff]  ;;  %v101_v23 = vld [vmem:[#allocation5 + $0x50] sm:$0xff] }
  0x2e   :  { %1036 = vmatpush3.msra.mxu1 %v136_v12  ;;  %1002 = vmatprep.subr.mxu0 %v119_v13  ;;  %v133_v24 = vld [vmem:[#allocation5 + $0x150] sm:$0xff]  ;;  %v116_v25 = vld [vmem:[#allocation5 + $0xc8] sm:$0xff]  ;;  %v115_v29 = vld [vmem:[#allocation5 + $0xc0] sm:$0xff] }
  0x2f   :  { %1037 = vmatprep.subr.mxu1 %v151_v14  ;;  %1003 = vmatpush3.msra.mxu0 %v103_v15  ;;  %v148_v26 = vld [vmem:[#allocation5 + $0x1c8] sm:$0xff]  ;;  %v147_v30 = vld [vmem:[#allocation5 + $0x1c0] sm:$0xff]  ;;  %v114_v33 = vld [vmem:[#allocation5 + $0xb8] sm:$0xff] }
  0x30   :  { %1038 = vmatpush3.msra.mxu1 %v135_v16  ;;  %1004 = vmatprep.subr.mxu0 %v118_v17  ;;  %v100_v27 = vld [vmem:[#allocation5 + $0x48] sm:$0xff]  ;;  %v99_v31 = vld [vmem:[#allocation5 + $0x40] sm:$0xff]  ;;  %v146_v34 = vld [vmem:[#allocation5 + $0x1b8] sm:$0xff] }
  0x31   :  { %1039 = vmatprep.subr.mxu1 %v150_v18  ;;  %1005 = vmatpush3.msra.mxu0 %v102_v19  ;;  %v132_v28 = vld [vmem:[#allocation5 + $0x148] sm:$0xff]  ;;  %v131_v32 = vld [vmem:[#allocation5 + $0x140] sm:$0xff]  ;;  %v98_v35 = vld [vmem:[#allocation5 + $0x38] sm:$0xff] }
  0x32   :  { %1040 = vmatpush3.msra.mxu1 %v134_v20  ;;  %1006 = vmatprep.subr.mxu0 %v117_v21  ;;  %v130_v36 = vld [vmem:[#allocation5 + $0x138] sm:$0xff]  ;;  %v113_v37 = vld [vmem:[#allocation5 + $0xb0] sm:$0xff]  ;;  %v112_v41 = vld [vmem:[#allocation5 + $0xa8] sm:$0xff] }
  0x33   :  { %1041 = vmatprep.subr.mxu1 %v149_v22  ;;  %1007 = vmatpush3.msra.mxu0 %v101_v23  ;;  %v145_v38 = vld [vmem:[#allocation5 + $0x1b0] sm:$0xff]  ;;  %v144_v42 = vld [vmem:[#allocation5 + $0x1a8] sm:$0xff]  ;;  %v111_v45 = vld [vmem:[#allocation5 + $0xa0] sm:$0xff] }
  0x34   :  { %1042 = vmatpush3.msra.mxu1 %v133_v24  ;;  %1008 = vmatprep.subr.mxu0 %v116_v25  ;;  %v97_v39 = vld [vmem:[#allocation5 + $0x30] sm:$0xff]  ;;  %v96_v43 = vld [vmem:[#allocation5 + $0x28] sm:$0xff]  ;;  %v143_v46 = vld [vmem:[#allocation5 + $0x1a0] sm:$0xff] }
  0x35   :  { %1043 = vmatprep.subr.mxu1 %v148_v26  ;;  %1009 = vmatpush3.msra.mxu0 %v100_v27  ;;  %v129_v40 = vld [vmem:[#allocation5 + $0x130] sm:$0xff]  ;;  %v128_v44 = vld [vmem:[#allocation5 + $0x128] sm:$0xff]  ;;  %v95_v47 = vld [vmem:[#allocation5 + $0x20] sm:$0xff] }
  0x36   :  { %1044 = vmatpush3.msra.mxu1 %v132_v28  ;;  %1010 = vmatprep.subr.mxu0 %v115_v29  ;;  %v127_v48 = vld [vmem:[#allocation5 + $0x120] sm:$0xff]  ;;  %v110_v49 = vld [vmem:[#allocation5 + $0x98] sm:$0xff]  ;;  %v109_v53 = vld [vmem:[#allocation5 + $0x90] sm:$0xff] }
  0x37   :  { %1045 = vmatprep.subr.mxu1 %v147_v30  ;;  %1011 = vmatpush3.msra.mxu0 %v99_v31  ;;  %v142_v50 = vld [vmem:[#allocation5 + $0x198] sm:$0xff]  ;;  %v141_v54 = vld [vmem:[#allocation5 + $0x190] sm:$0xff]  ;;  %v108_v57 = vld [vmem:[#allocation5 + $0x88] sm:$0xff] }
  0x38   :  { %1046 = vmatpush3.msra.mxu1 %v131_v32  ;;  %1012 = vmatprep.subr.mxu0 %v114_v33  ;;  %v94_v51 = vld [vmem:[#allocation5 + $0x18] sm:$0xff]  ;;  %v93_v55 = vld [vmem:[#allocation5 + $0x10] sm:$0xff]  ;;  %v140_v58 = vld [vmem:[#allocation5 + $0x188] sm:$0xff] }
  0x39   :  { %1047 = vmatprep.subr.mxu1 %v146_v34  ;;  %1013 = vmatpush3.msra.mxu0 %v98_v35  ;;  %v126_v52 = vld [vmem:[#allocation5 + $0x118] sm:$0xff]  ;;  %v125_v56 = vld [vmem:[#allocation5 + $0x110] sm:$0xff]  ;;  %v92_v59 = vld [vmem:[#allocation5 + $0x8] sm:$0xff] }
  0x3a   :  { %1048 = vmatpush3.msra.mxu1 %v130_v36  ;;  %1014 = vmatprep.subr.mxu0 %v113_v37  ;;  %v124_v60 = vld [vmem:[#allocation5 + $0x108] sm:$0xff]  ;;  %v107_v61 = vld [vmem:[#allocation5 + $0x80] sm:$0xff]  ;;  %v86_v2 = vld [vmem:[#allocation2 + $0x18] sm:$0xff] }
  0x3b   :  { %1049 = vmatprep.subr.mxu1 %v145_v38  ;;  %1015 = vmatpush3.msra.mxu0 %v97_v39  ;;  %v139_v62 = vld [vmem:[#allocation5 + $0x180] sm:$0xff]  ;;  %v84_v0 = vld [vmem:[#allocation2 + $0x8] sm:$0xff]  ;;  %v85_v4 = vld [vmem:[#allocation2 + $0x10] sm:$0xff] }
  0x3c   :  { %1050 = vmatpush3.msra.mxu1 %v129_v40  ;;  %1016 = vmatprep.subr.mxu0 %v112_v41  ;;  %v91_v63 = vld [vmem:[#allocation5] sm:$0xff]  ;;  %v186_v5 = vld [vmem:[#allocation5 + $0x2f8] sm:$0xff]  ;;  %v185_v9 = vld [vmem:[#allocation5 + $0x2f0] sm:$0xff] }
  0x3d   :  { %1051 = vmatprep.subr.mxu1 %v144_v42  ;;  %1017 = vmatpush3.msra.mxu0 %v96_v43  ;;  %v123_v1 = vld [vmem:[#allocation5 + $0x100] sm:$0xff]  ;;  %v218_v6 = vld [vmem:[#allocation5 + $0x3f8] sm:$0xff]  ;;  %v217_v10 = vld [vmem:[#allocation5 + $0x3f0] sm:$0xff] }
  0x3e   :  { %1052 = vmatpush3.msra.mxu1 %v128_v44  ;;  %1018 = vmatprep.subr.mxu0 %v111_v45  ;;  %v83_v3 = vld [vmem:[#allocation2] sm:$0xff]  ;;  %v170_v7 = vld [vmem:[#allocation5 + $0x278] sm:$0xff]  ;;  %v169_v11 = vld [vmem:[#allocation5 + $0x270] sm:$0xff] }
  0x3f   :  { %1053 = vmatprep.subr.mxu1 %v143_v46  ;;  %1019 = vmatpush3.msra.mxu0 %v95_v47  ;;  %v202_v8 = vld [vmem:[#allocation5 + $0x378] sm:$0xff]  ;;  %v201_v12 = vld [vmem:[#allocation5 + $0x370] sm:$0xff]  ;;  %v184_v13 = vld [vmem:[#allocation5 + $0x2e8] sm:$0xff] }
  0x40   :  { %1054 = vmatpush3.msra.mxu1 %v127_v48  ;;  %1020 = vmatprep.subr.mxu0 %v110_v49  ;;  %v216_v14 = vld [vmem:[#allocation5 + $0x3e8] sm:$0xff]  ;;  %v183_v17 = vld [vmem:[#allocation5 + $0x2e0] sm:$0xff]  ;;  %v182_v21 = vld [vmem:[#allocation5 + $0x2d8] sm:$0xff] }
  0x41   :  { %1055 = vmatprep.subr.mxu1 %v142_v50  ;;  %1021 = vmatpush3.msra.mxu0 %v94_v51  ;;  %v168_v15 = vld [vmem:[#allocation5 + $0x268] sm:$0xff]  ;;  %v215_v18 = vld [vmem:[#allocation5 + $0x3e0] sm:$0xff]  ;;  %v214_v22 = vld [vmem:[#allocation5 + $0x3d8] sm:$0xff] }
  0x42   :  { %1056 = vmatpush3.msra.mxu1 %v126_v52  ;;  %1022 = vmatprep.subr.mxu0 %v109_v53  ;;  %v200_v16 = vld [vmem:[#allocation5 + $0x368] sm:$0xff]  ;;  %v167_v19 = vld [vmem:[#allocation5 + $0x260] sm:$0xff]  ;;  %v166_v23 = vld [vmem:[#allocation5 + $0x258] sm:$0xff] }
  0x43   :  { %1057 = vmatprep.subr.mxu1 %v141_v54  ;;  %1023 = vmatpush3.msra.mxu0 %v93_v55  ;;  %v199_v20 = vld [vmem:[#allocation5 + $0x360] sm:$0xff]  ;;  %v198_v24 = vld [vmem:[#allocation5 + $0x358] sm:$0xff]  ;;  %v181_v25 = vld [vmem:[#allocation5 + $0x2d0] sm:$0xff] }
  0x44   :  { %1058 = vmatpush3.msra.mxu1 %v125_v56  ;;  %1024 = vmatprep.subr.mxu0 %v108_v57  ;;  %v213_v26 = vld [vmem:[#allocation5 + $0x3d0] sm:$0xff]  ;;  %v180_v29 = vld [vmem:[#allocation5 + $0x2c8] sm:$0xff]  ;;  %v179_v33 = vld [vmem:[#allocation5 + $0x2c0] sm:$0xff] }
  0x45   :  { %1059 = vmatprep.subr.mxu1 %v140_v58  ;;  %1025 = vmatpush3.msra.mxu0 %v92_v59  ;;  %v165_v27 = vld [vmem:[#allocation5 + $0x250] sm:$0xff]  ;;  %v212_v30 = vld [vmem:[#allocation5 + $0x3c8] sm:$0xff]  ;;  %v211_v34 = vld [vmem:[#allocation5 + $0x3c0] sm:$0xff] }
  0x46   :  { %1060 = vmatpush3.msra.mxu1 %v124_v60  ;;  %1026 = vmatprep.subr.mxu0 %v107_v61  ;;  %v197_v28 = vld [vmem:[#allocation5 + $0x350] sm:$0xff]  ;;  %v164_v31 = vld [vmem:[#allocation5 + $0x248] sm:$0xff]  ;;  %v163_v35 = vld [vmem:[#allocation5 + $0x240] sm:$0xff] }
  0x47   :  { %1061 = vmatprep.subr.mxu1 %v139_v62  ;;  %1027 = vmatpush3.msra.mxu0 %v91_v63  ;;  %v196_v32 = vld [vmem:[#allocation5 + $0x348] sm:$0xff]  ;;  %v195_v36 = vld [vmem:[#allocation5 + $0x340] sm:$0xff]  ;;  %v178_v37 = vld [vmem:[#allocation5 + $0x2b8] sm:$0xff] }
  0x48   :  { %283 = vmatprep.mubr.f32.mxu0 %v84_v0  ;;  %1062 = vmatpush3.msra.mxu1 %v123_v1  ;;  %v210_v38 = vld [vmem:[#allocation5 + $0x3b8] sm:$0xff]  ;;  %v177_v41 = vld [vmem:[#allocation5 + $0x2b0] sm:$0xff]  ;;  %v176_v45 = vld [vmem:[#allocation5 + $0x2a8] sm:$0xff] }
  0x49   :  { %353 = vmatprep.mubr.f32.mxu1 %v86_v2  ;;  %284 = vmatmul.mubr.f32.vlgmr.msra.gmra.mxu0 %v83_v3  ;;  %v162_v39 = vld [vmem:[#allocation5 + $0x238] sm:$0xff]  ;;  %v209_v42 = vld [vmem:[#allocation5 + $0x3b0] sm:$0xff]  ;;  %v208_v46 = vld [vmem:[#allocation5 + $0x3a8] sm:$0xff] }
  0x4a   :  { %354 = vmatmul.mubr.f32.vlgmr.msra.gmra.mxu1 %v85_v4  ;;  %1066 = vmatprep.subr.mxu0 %v186_v5  ;;  %v194_v40 = vld [vmem:[#allocation5 + $0x338] sm:$0xff]  ;;  %v161_v43 = vld [vmem:[#allocation5 + $0x230] sm:$0xff]  ;;  %v160_v47 = vld [vmem:[#allocation5 + $0x228] sm:$0xff] }
  0x4b   :  { %1101 = vmatprep.subr.mxu1 %v218_v6  ;;  %1067 = vmatpush3.msra.mxu0 %v170_v7  ;;  %v193_v44 = vld [vmem:[#allocation5 + $0x330] sm:$0xff]  ;;  %v192_v48 = vld [vmem:[#allocation5 + $0x328] sm:$0xff]  ;;  %v175_v49 = vld [vmem:[#allocation5 + $0x2a0] sm:$0xff] }
  0x4c   :  { %1102 = vmatpush3.msra.mxu1 %v202_v8  ;;  %1068 = vmatprep.subr.mxu0 %v185_v9  ;;  %v207_v50 = vld [vmem:[#allocation5 + $0x3a0] sm:$0xff]  ;;  %v174_v53 = vld [vmem:[#allocation5 + $0x298] sm:$0xff]  ;;  %v173_v57 = vld [vmem:[#allocation5 + $0x290] sm:$0xff] }
  0x4d   :  { %1103 = vmatprep.subr.mxu1 %v217_v10  ;;  %1069 = vmatpush3.msra.mxu0 %v169_v11  ;;  %v159_v51 = vld [vmem:[#allocation5 + $0x220] sm:$0xff]  ;;  %v206_v54 = vld [vmem:[#allocation5 + $0x398] sm:$0xff]  ;;  %v205_v58 = vld [vmem:[#allocation5 + $0x390] sm:$0xff] }
  0x4e   :  { %1104 = vmatpush3.msra.mxu1 %v201_v12  ;;  %1070 = vmatprep.subr.mxu0 %v184_v13  ;;  %v191_v52 = vld [vmem:[#allocation5 + $0x320] sm:$0xff]  ;;  %v158_v55 = vld [vmem:[#allocation5 + $0x218] sm:$0xff]  ;;  %v157_v59 = vld [vmem:[#allocation5 + $0x210] sm:$0xff] }
  0x4f   :  { %1105 = vmatprep.subr.mxu1 %v216_v14  ;;  %1071 = vmatpush3.msra.mxu0 %v168_v15  ;;  %v190_v56 = vld [vmem:[#allocation5 + $0x318] sm:$0xff]  ;;  %v189_v60 = vld [vmem:[#allocation5 + $0x310] sm:$0xff]  ;;  %v172_v61 = vld [vmem:[#allocation5 + $0x288] sm:$0xff] }
  0x50   :  { %1106 = vmatpush3.msra.mxu1 %v200_v16  ;;  %1072 = vmatprep.subr.mxu0 %v183_v17  ;;  %v204_v62 = vld [vmem:[#allocation5 + $0x388] sm:$0xff]  ;;  %v171_v1 = vld [vmem:[#allocation5 + $0x280] sm:$0xff]  ;;  %v90_v7 = vld [vmem:[#allocation2 + $0x38] sm:$0xff] }
  0x51   :  { %1107 = vmatprep.subr.mxu1 %v215_v18  ;;  %1073 = vmatpush3.msra.mxu0 %v167_v19  ;;  %v156_v63 = vld [vmem:[#allocation5 + $0x208] sm:$0xff]  ;;  %v203_v2 = vld [vmem:[#allocation5 + $0x380] sm:$0xff]  ;;  %v89_v9 = vld [vmem:[#allocation2 + $0x30] sm:$0xff] }
  0x52   :  { %1108 = vmatpush3.msra.mxu1 %v199_v20  ;;  %1074 = vmatprep.subr.mxu0 %v182_v21  ;;  %v188_v0 = vld [vmem:[#allocation5 + $0x308] sm:$0xff]  ;;  %v66_v3 = vld [vmem:[%s1319_s0] sm:$0xff]  ;;  %v631_v12 = vld [vmem:[#allocation7 + $0x3d8] sm:$0xff] }
  0x53   :  { %1109 = vmatprep.subr.mxu1 %v214_v22  ;;  %1075 = vmatpush3.msra.mxu0 %v166_v23  ;;  %v155_v4 = vld [vmem:[#allocation5 + $0x200] sm:$0xff]  ;;  %v88_v5 = vld [vmem:[#allocation2 + $0x28] sm:$0xff]  ;;  %v68_v10 = vmul.f32 %v66_v3, %v66_v3  ;;  %v630_v14 = vld [vmem:[#allocation7 + $0x3d0] sm:$0xff] }
  0x54   :  { %1110 = vmatpush3.msra.mxu1 %v198_v24  ;;  %1076 = vmatprep.subr.mxu0 %v181_v25  ;;  %v187_v6 = vld [vmem:[#allocation5 + $0x300] sm:$0xff]  ;;  %v629_v11 = vld [vmem:[#allocation7 + $0x3c8] sm:$0xff]  ;;  %v623_v16 = vld [vmem:[#allocation7 + $0x398] sm:$0xff] }
  0x55   :  { %1111 = vmatprep.subr.mxu1 %v213_v26  ;;  %1077 = vmatpush3.msra.mxu0 %v165_v27  ;;  %v87_v8 = vld [vmem:[#allocation2 + $0x20] sm:$0xff]  ;;  %v621_v15 = vld [vmem:[#allocation7 + $0x388] sm:$0xff]  ;;  %v622_v18 = vld [vmem:[#allocation7 + $0x390] sm:$0xff] }
  0x56   :  { %1112 = vmatpush3.msra.mxu1 %v197_v28  ;;  %1078 = vmatprep.subr.mxu0 %v180_v29  ;;  %v628_v13 = vld [vmem:[#allocation7 + $0x3c0] sm:$0xff]  ;;  %v613_v19 = vld [vmem:[#allocation7 + $0x348] sm:$0xff]  ;;  %v615_v20 = vld [vmem:[#allocation7 + $0x358] sm:$0xff] }
  0x57   :  { %1113 = vmatprep.subr.mxu1 %v212_v30  ;;  %1079 = vmatpush3.msra.mxu0 %v164_v31  ;;  %v620_v17 = vld [vmem:[#allocation7 + $0x380] sm:$0xff]  ;;  %v614_v22 = vld [vmem:[#allocation7 + $0x350] sm:$0xff]  ;;  %v605_v23 = vld [vmem:[#allocation7 + $0x308] sm:$0xff] }
  0x58   :  { %1114 = vmatpush3.msra.mxu1 %v196_v32  ;;  %1080 = vmatprep.subr.mxu0 %v179_v33  ;;  %v612_v21 = vld [vmem:[#allocation7 + $0x340] sm:$0xff]  ;;  %v607_v24 = vld [vmem:[#allocation7 + $0x318] sm:$0xff]  ;;  %v606_v26 = vld [vmem:[#allocation7 + $0x310] sm:$0xff] }
  0x59   :  { %1115 = vmatprep.subr.mxu1 %v211_v34  ;;  %1081 = vmatpush3.msra.mxu0 %v163_v35  ;;  %v604_v25 = vld [vmem:[#allocation7 + $0x300] sm:$0xff]  ;;  %v597_v27 = vld [vmem:[#allocation7 + $0x2c8] sm:$0xff]  ;;  %v599_v28 = vld [vmem:[#allocation7 + $0x2d8] sm:$0xff] }
  0x5a   :  { %1116 = vmatpush3.msra.mxu1 %v195_v36  ;;  %1082 = vmatprep.subr.mxu0 %v178_v37  ;;  %v596_v29 = vld [vmem:[#allocation7 + $0x2c0] sm:$0xff]  ;;  %v598_v30 = vld [vmem:[#allocation7 + $0x2d0] sm:$0xff]  ;;  %v589_v31 = vld [vmem:[#allocation7 + $0x288] sm:$0xff] }
  0x5b   :  { %1117 = vmatprep.subr.mxu1 %v210_v38  ;;  %1083 = vmatpush3.msra.mxu0 %v162_v39  ;;  %v591_v32 = vld [vmem:[#allocation7 + $0x298] sm:$0xff]  ;;  %v588_v33 = vld [vmem:[#allocation7 + $0x280] sm:$0xff]  ;;  %v590_v34 = vld [vmem:[#allocation7 + $0x290] sm:$0xff] }
  0x5c   :  { %1118 = vmatpush3.msra.mxu1 %v194_v40  ;;  %1084 = vmatprep.subr.mxu0 %v177_v41  ;;  %v581_v35 = vld [vmem:[#allocation7 + $0x248] sm:$0xff]  ;;  %v583_v36 = vld [vmem:[#allocation7 + $0x258] sm:$0xff]  ;;  %v580_v37 = vld [vmem:[#allocation7 + $0x240] sm:$0xff] }
  0x5d   :  { %1119 = vmatprep.subr.mxu1 %v209_v42  ;;  %1085 = vmatpush3.msra.mxu0 %v161_v43  ;;  %v582_v38 = vld [vmem:[#allocation7 + $0x250] sm:$0xff]  ;;  %v573_v39 = vld [vmem:[#allocation7 + $0x208] sm:$0xff]  ;;  %v575_v40 = vld [vmem:[#allocation7 + $0x218] sm:$0xff] }
  0x5e   :  { %1120 = vmatpush3.msra.mxu1 %v193_v44  ;;  %1086 = vmatprep.subr.mxu0 %v176_v45  ;;  %v572_v41 = vld [vmem:[#allocation7 + $0x200] sm:$0xff]  ;;  %v574_v42 = vld [vmem:[#allocation7 + $0x210] sm:$0xff]  ;;  %v565_v43 = vld [vmem:[#allocation7 + $0x1c8] sm:$0xff] }
  0x5f   :  { %1121 = vmatprep.subr.mxu1 %v208_v46  ;;  %1087 = vmatpush3.msra.mxu0 %v160_v47  ;;  %v567_v44 = vld [vmem:[#allocation7 + $0x1d8] sm:$0xff]  ;;  %v564_v45 = vld [vmem:[#allocation7 + $0x1c0] sm:$0xff]  ;;  %v566_v46 = vld [vmem:[#allocation7 + $0x1d0] sm:$0xff] }
  0x60   :  { %1122 = vmatpush3.msra.mxu1 %v192_v48  ;;  %1088 = vmatprep.subr.mxu0 %v175_v49  ;;  %v557_v47 = vld [vmem:[#allocation7 + $0x188] sm:$0xff]  ;;  %v559_v48 = vld [vmem:[#allocation7 + $0x198] sm:$0xff]  ;;  %v556_v49 = vld [vmem:[#allocation7 + $0x180] sm:$0xff] }
  0x61   :  { %1123 = vmatprep.subr.mxu1 %v207_v50  ;;  %1089 = vmatpush3.msra.mxu0 %v159_v51  ;;  %v558_v50 = vld [vmem:[#allocation7 + $0x190] sm:$0xff]  ;;  %v549_v51 = vld [vmem:[#allocation7 + $0x148] sm:$0xff] }
  0x62   :  { %1124 = vmatpush3.msra.mxu1 %v191_v52  ;;  %1090 = vmatprep.subr.mxu0 %v174_v53  ;;  %v551_v52 = vld [vmem:[#allocation7 + $0x158] sm:$0xff]  ;;  %v548_v53 = vld [vmem:[#allocation7 + $0x140] sm:$0xff]  ;;  %v517_v3 = vld [vmem:[#allocation7 + $0x48] sm:$0xff] }
  0x63   :  { %1125 = vmatprep.subr.mxu1 %v206_v54  ;;  %1091 = vmatpush3.msra.mxu0 %v158_v55  ;;  %v550_v54 = vld [vmem:[#allocation7 + $0x150] sm:$0xff]  ;;  %v541_v55 = vld [vmem:[#allocation7 + $0x108] sm:$0xff] }
  0x64   :  { %1126 = vmatpush3.msra.mxu1 %v190_v56  ;;  %1092 = vmatprep.subr.mxu0 %v173_v57  ;;  %v543_v56 = vld [vmem:[#allocation7 + $0x118] sm:$0xff]  ;;  %v540_v57 = vld [vmem:[#allocation7 + $0x100] sm:$0xff] }
  0x65   :  { %1127 = vmatprep.subr.mxu1 %v205_v58  ;;  %1093 = vmatpush3.msra.mxu0 %v157_v59  ;;  %v542_v58 = vld [vmem:[#allocation7 + $0x110] sm:$0xff]  ;;  %v533_v59 = vld [vmem:[#allocation7 + $0xc8] sm:$0xff] }
  0x66   :  { %1128 = vmatpush3.msra.mxu1 %v189_v60  ;;  %1094 = vmatprep.subr.mxu0 %v172_v61  ;;  %v535_v60 = vld [vmem:[#allocation7 + $0xd8] sm:$0xff]  ;;  %v532_v61 = vld [vmem:[#allocation7 + $0xc0] sm:$0xff] }
  0x67   :  { %1129 = vmatprep.subr.mxu1 %v204_v62  ;;  %1095 = vmatpush3.msra.mxu0 %v156_v63  ;;  %v534_v62 = vld [vmem:[#allocation7 + $0xd0] sm:$0xff]  ;;  %v525_v63 = vld [vmem:[#allocation7 + $0x88] sm:$0xff] }
  0x68   :  { %1130 = vmatpush3.msra.mxu1 %v188_v0  ;;  %1096 = vmatprep.subr.mxu0 %v171_v1  ;;  %v527_v0 = vld [vmem:[#allocation7 + $0x98] sm:$0xff]  ;;  %v524_v1 = vld [vmem:[#allocation7 + $0x80] sm:$0xff] }
  0x69   :  { %1131 = vmatprep.subr.mxu1 %v203_v2  ;;  %1097 = vmatpush3.msra.mxu0 %v155_v4  ;;  %v526_v2 = vld [vmem:[#allocation7 + $0x90] sm:$0xff]  ;;  %v519_v4 = vld [vmem:[#allocation7 + $0x58] sm:$0xff] }
  0x6a   :  { %423 = vmatprep.mubr.f32.mxu0 %v88_v5  ;;  %1132 = vmatpush3.msra.mxu1 %v187_v6  ;;  %v516_v5 = vld [vmem:[#allocation7 + $0x40] sm:$0xff]  ;;  %v518_v6 = vld [vmem:[#allocation7 + $0x50] sm:$0xff] }
  0x6b   :  { %493 = vmatprep.mubr.f32.mxu1 %v90_v7  ;;  %424 = vmatmul.mubr.f32.vlgmr.msra.gmra.mxu0 %v87_v8  ;;  %v509_v7 = vld [vmem:[#allocation7 + $0x8] sm:$0xff]  ;;  %v511_v8 = vld [vmem:[#allocation7 + $0x18] sm:$0xff] }
  0x6c   :  { %494 = vmatmul.mubr.f32.vlgmr.msra.gmra.mxu1 %v89_v9  ;;  %77 = vperm.xlu0 %1146, %v68_v10   ;;  %v508_v9 = vld [vmem:[#allocation7] sm:$0xff]  ;;  %v510_v10 = vld [vmem:[#allocation7 + $0x10] sm:$0xff] }
  0x6d   :  { %636 = vmatprep.subr.mxu0 %v629_v11  ;;  %707 = vmatprep.subr.mxu1 %v631_v12  ;;  %v633_v11 = vld [vmem:[#allocation7 + $0x3e8] sm:$0xff]  ;;  %v635_v12 = vld [vmem:[#allocation7 + $0x3f8] sm:$0xff] }
  0x6e   :  { %637 = vmatpush1.msra.mxu0 %v628_v13  ;;  %708 = vmatpush1.msra.mxu1 %v630_v14  ;;  %v1243_v13 = vmov 0.0   ;;  %v994_v14 = vld [vmem:[%s1324_s5] ss:$0 sm:$0xff] }
  0x6f   :  { %638 = vmatprep.subr.mxu0 %v621_v15  ;;  %709 = vmatprep.subr.mxu1 %v623_v16 }
  0x70   :  { %639 = vmatpush1.msra.mxu0 %v620_v17  ;;  %710 = vmatpush1.msra.mxu1 %v622_v18 }
  0x71   :  { %640 = vmatprep.subr.mxu0 %v613_v19  ;;  %711 = vmatprep.subr.mxu1 %v615_v20 }
  0x72   :  { %641 = vmatpush1.msra.mxu0 %v612_v21  ;;  %712 = vmatpush1.msra.mxu1 %v614_v22 }
  0x73   :  { %642 = vmatprep.subr.mxu0 %v605_v23  ;;  %713 = vmatprep.subr.mxu1 %v607_v24 }
  0x74   :  { %643 = vmatpush1.msra.mxu0 %v604_v25  ;;  %714 = vmatpush1.msra.mxu1 %v606_v26 }
  0x75   :  { %644 = vmatprep.subr.mxu0 %v597_v27  ;;  %715 = vmatprep.subr.mxu1 %v599_v28 }
  0x76   :  { %645 = vmatpush1.msra.mxu0 %v596_v29  ;;  %716 = vmatpush1.msra.mxu1 %v598_v30 }
  0x77   :  { %646 = vmatprep.subr.mxu0 %v589_v31  ;;  %717 = vmatprep.subr.mxu1 %v591_v32  ;;  %v995_v32 = vld [vmem:[%s1322_s3] ss:$0 sm:$0xff] }
  0x78   :  { %647 = vmatpush1.msra.mxu0 %v588_v33  ;;  %718 = vmatpush1.msra.mxu1 %v590_v34 }
  0x79   :  { %648 = vmatprep.subr.mxu0 %v581_v35  ;;  %719 = vmatprep.subr.mxu1 %v583_v36 }
  0x7a   :  { %649 = vmatpush1.msra.mxu0 %v580_v37  ;;  %720 = vmatpush1.msra.mxu1 %v582_v38  ;;  %v632_v37 = vld [vmem:[#allocation7 + $0x3e0] sm:$0xff]  ;;  %v634_v38 = vld [vmem:[#allocation7 + $0x3f0] sm:$0xff] }
  0x7b   :  { %650 = vmatprep.subr.mxu0 %v573_v39  ;;  %721 = vmatprep.subr.mxu1 %v575_v40  ;;  %v625_v39 = vld [vmem:[#allocation7 + $0x3a8] sm:$0xff]  ;;  %v627_v40 = vld [vmem:[#allocation7 + $0x3b8] sm:$0xff] }
  0x7c   :  { %651 = vmatpush1.msra.mxu0 %v572_v41  ;;  %722 = vmatpush1.msra.mxu1 %v574_v42  ;;  %v624_v41 = vld [vmem:[#allocation7 + $0x3a0] sm:$0xff]  ;;  %v626_v42 = vld [vmem:[#allocation7 + $0x3b0] sm:$0xff] }
  0x7d   :  { %652 = vmatprep.subr.mxu0 %v565_v43  ;;  %723 = vmatprep.subr.mxu1 %v567_v44  ;;  %v617_v43 = vld [vmem:[#allocation7 + $0x368] sm:$0xff]  ;;  %v619_v44 = vld [vmem:[#allocation7 + $0x378] sm:$0xff] }
  0x7e   :  { %653 = vmatpush1.msra.mxu0 %v564_v45  ;;  %724 = vmatpush1.msra.mxu1 %v566_v46  ;;  %v616_v45 = vld [vmem:[#allocation7 + $0x360] sm:$0xff]  ;;  %v618_v46 = vld [vmem:[#allocation7 + $0x370] sm:$0xff] }
  0x7f   :  { %654 = vmatprep.subr.mxu0 %v557_v47  ;;  %725 = vmatprep.subr.mxu1 %v559_v48  ;;  %v609_v47 = vld [vmem:[#allocation7 + $0x328] sm:$0xff]  ;;  %v611_v48 = vld [vmem:[#allocation7 + $0x338] sm:$0xff] }
  0x80   :  { %655 = vmatpush1.msra.mxu0 %v556_v49  ;;  %726 = vmatpush1.msra.mxu1 %v558_v50  ;;  %v608_v49 = vld [vmem:[#allocation7 + $0x320] sm:$0xff]  ;;  %v610_v50 = vld [vmem:[#allocation7 + $0x330] sm:$0xff] }
  0x81   :  { %656 = vmatprep.subr.mxu0 %v549_v51  ;;  %727 = vmatprep.subr.mxu1 %v551_v52  ;;  %v601_v51 = vld [vmem:[#allocation7 + $0x2e8] sm:$0xff]  ;;  %v603_v52 = vld [vmem:[#allocation7 + $0x2f8] sm:$0xff] }
  0x82   :  { %657 = vmatpush1.msra.mxu0 %v548_v53  ;;  %728 = vmatpush1.msra.mxu1 %v550_v54  ;;  %v600_v53 = vld [vmem:[#allocation7 + $0x2e0] sm:$0xff]  ;;  %v602_v54 = vld [vmem:[#allocation7 + $0x2f0] sm:$0xff] }
  0x83   :  { %658 = vmatprep.subr.mxu0 %v541_v55  ;;  %729 = vmatprep.subr.mxu1 %v543_v56  ;;  %v593_v55 = vld [vmem:[#allocation7 + $0x2a8] sm:$0xff]  ;;  %v595_v56 = vld [vmem:[#allocation7 + $0x2b8] sm:$0xff] }
  0x84   :  { %659 = vmatpush1.msra.mxu0 %v540_v57  ;;  %730 = vmatpush1.msra.mxu1 %v542_v58  ;;  %v592_v57 = vld [vmem:[#allocation7 + $0x2a0] sm:$0xff]  ;;  %v594_v58 = vld [vmem:[#allocation7 + $0x2b0] sm:$0xff] }
  0x85   :  { %660 = vmatprep.subr.mxu0 %v533_v59  ;;  %731 = vmatprep.subr.mxu1 %v535_v60  ;;  %v585_v59 = vld [vmem:[#allocation7 + $0x268] sm:$0xff]  ;;  %v587_v60 = vld [vmem:[#allocation7 + $0x278] sm:$0xff] }
  0x86   :  { %661 = vmatpush1.msra.mxu0 %v532_v61  ;;  %732 = vmatpush1.msra.mxu1 %v534_v62  ;;  %v584_v61 = vld [vmem:[#allocation7 + $0x260] sm:$0xff]  ;;  %v586_v62 = vld [vmem:[#allocation7 + $0x270] sm:$0xff] }
  0x87   :  { %662 = vmatprep.subr.mxu0 %v525_v63  ;;  %733 = vmatprep.subr.mxu1 %v527_v0  ;;  %v577_v63 = vld [vmem:[#allocation7 + $0x228] sm:$0xff]  ;;  %v579_v0 = vld [vmem:[#allocation7 + $0x238] sm:$0xff] }
  0x88   :  { %663 = vmatpush1.msra.mxu0 %v524_v1  ;;  %734 = vmatpush1.msra.mxu1 %v526_v2  ;;  %v576_v1 = vld [vmem:[#allocation7 + $0x220] sm:$0xff]  ;;  %v578_v2 = vld [vmem:[#allocation7 + $0x230] sm:$0xff] }
  0x89   :  { %664 = vmatprep.subr.mxu0 %v517_v3  ;;  %735 = vmatprep.subr.mxu1 %v519_v4  ;;  %v569_v3 = vld [vmem:[#allocation7 + $0x1e8] sm:$0xff]  ;;  %v571_v4 = vld [vmem:[#allocation7 + $0x1f8] sm:$0xff] }
  0x8a   :  { %665 = vmatpush1.msra.mxu0 %v516_v5  ;;  %736 = vmatpush1.msra.mxu1 %v518_v6  ;;  %v568_v5 = vld [vmem:[#allocation7 + $0x1e0] sm:$0xff]  ;;  %v570_v6 = vld [vmem:[#allocation7 + $0x1f0] sm:$0xff] }
  0x8b   :  { %666 = vmatprep.subr.mxu0 %v509_v7  ;;  %737 = vmatprep.subr.mxu1 %v511_v8  ;;  %v561_v7 = vld [vmem:[#allocation7 + $0x1a8] sm:$0xff]  ;;  %v563_v8 = vld [vmem:[#allocation7 + $0x1b8] sm:$0xff] }
  0x8c   :  { %667 = vmatpush1.msra.mxu0 %v508_v9  ;;  %738 = vmatpush1.msra.mxu1 %v510_v10  ;;  %v560_v9 = vld [vmem:[#allocation7 + $0x1a0] sm:$0xff]  ;;  %v562_v10 = vld [vmem:[#allocation7 + $0x1b0] sm:$0xff] }
  0x8d   :  { %700 = vmatprep.mubr.f32.mxu0 %v1243_v13  ;;  %771 = vmatprep.mubr.f32.mxu1 %v1243_v13 }
  0x8e   :  { %778 = vmatprep.subr.mxu0 %v633_v11  ;;  %849 = vmatprep.subr.mxu1 %v635_v12  ;;  %v553_v11 = vld [vmem:[#allocation7 + $0x168] sm:$0xff]  ;;  %v555_v12 = vld [vmem:[#allocation7 + $0x178] sm:$0xff] }
  0xe7   :  { %v78_v15 = vpop.permute.xlu0 %77 }
  0xe8   :  { %v80_v16 = vadd.f32 %v994_v14, %v78_v15  ;;  %v554_v15 = vld [vmem:[#allocation7 + $0x170] sm:$0xff] }
  0xea   :  { %1147 = vrcp.f32 %v80_v16  ;;  %v545_v16 = vld [vmem:[#allocation7 + $0x128] sm:$0xff] }
  0xf7   :  { %v1148_v29 = vpop.eup %1147 }
  0xf8   :  { %v82_v33 = vmul.f32 %v1148_v29, %v994_v14  ;;  %v552_v14 = vld [vmem:[#allocation7 + $0x160] sm:$0xff]  ;;  %v523_v29 = vld [vmem:[#allocation7 + $0x78] sm:$0xff] }
 0x109   :  { %v1028_v17 = vpop.f32.mrf.mxu0 }
 0x10a   :  { %v1063_v18 = vpop.f32.mrf.mxu1 }
 0x10b   :  { %v1029_v19 = vpop.f32.mrf.mxu0 }
 0x10c   :  { %v1064_v20 = vpop.f32.mrf.mxu1  ;;  %v1030_v21 = vadd.f32 %v1029_v19, %v1028_v17  ;;  %v547_v17 = vld [vmem:[#allocation7 + $0x138] sm:$0xff]  ;;  %v546_v19 = vld [vmem:[#allocation7 + $0x130] sm:$0xff] }
 0x10d   :  { %v1065_v22 = vadd.f32 %v1064_v20, %v1063_v18  ;;  %v544_v18 = vld [vmem:[#allocation7 + $0x120] sm:$0xff]  ;;  %v537_v20 = vld [vmem:[#allocation7 + $0xe8] sm:$0xff] }
 0x10f   :  { %v356_v27 = vadd.f32 %v1065_v22, %v1030_v21  ;;  %v539_v21 = vld [vmem:[#allocation7 + $0xf8] sm:$0xff]  ;;  %v536_v22 = vld [vmem:[#allocation7 + $0xe0] sm:$0xff] }
 0x12b   :  { %v1098_v23 = vpop.f32.mrf.mxu0 }
 0x12c   :  { %v1133_v24 = vpop.f32.mrf.mxu1 }
 0x12d   :  { %v1099_v25 = vpop.f32.mrf.mxu0 }
 0x12e   :  { %v1134_v26 = vpop.f32.mrf.mxu1  ;;  %v1100_v28 = vadd.f32 %v1099_v25, %v1098_v23  ;;  %v538_v23 = vld [vmem:[#allocation7 + $0xf0] sm:$0xff]  ;;  %v531_v25 = vld [vmem:[#allocation7 + $0xb8] sm:$0xff] }
 0x12f   :  { %v1135_v31 = vadd.f32 %v1134_v26, %v1133_v24  ;;  %v529_v24 = vld [vmem:[#allocation7 + $0xa8] sm:$0xff]  ;;  %v528_v26 = vld [vmem:[#allocation7 + $0xa0] sm:$0xff] }
 0x130   :  { %v426_v30 = vadd.f32 %v1100_v28, %v356_v27  ;;  %v530_v27 = vld [vmem:[#allocation7 + $0xb0] sm:$0xff]  ;;  %v521_v28 = vld [vmem:[#allocation7 + $0x68] sm:$0xff] }
 0x132   :  { %v496_v34 = vadd.f32 %v1135_v31, %v426_v30  ;;  %v520_v30 = vld [vmem:[#allocation7 + $0x60] sm:$0xff]  ;;  %v522_v31 = vld [vmem:[#allocation7 + $0x70] sm:$0xff] }
 0x134   :  { %v506_v35 = vsub.f32 %v496_v34, %v995_v32  ;;  %v513_v32 = vld [vmem:[#allocation7 + $0x28] sm:$0xff]  ;;  %v512_v34 = vld [vmem:[#allocation7 + $0x20] sm:$0xff] }
 0x136   :  { %v1305_v36 = vmul.f32 %v506_v35, %v82_v33  ;;  %v515_v33 = vld [vmem:[#allocation7 + $0x38] sm:$0xff]  ;;  %v514_v35 = vld [vmem:[#allocation7 + $0x30] sm:$0xff] }
 0x138   :  { %701 = vmatmul.mubr.f32.vlgmr.msra.gmra.mxu0 %v1305_v36  ;;  %772 = vmatmul.mubr.f32.vlgmr.msra.gmra.mxu1 %v1305_v36 }
 0x139   :  { %779 = vmatpush1.msra.mxu0 %v632_v37  ;;  %850 = vmatpush1.msra.mxu1 %v634_v38  ;;  %v922_v37 = vlaneseq }
 0x13a   :  { %780 = vmatprep.subr.mxu0 %v625_v39  ;;  %851 = vmatprep.subr.mxu1 %v627_v40 }
 0x13b   :  { %781 = vmatpush1.msra.mxu0 %v624_v41  ;;  %852 = vmatpush1.msra.mxu1 %v626_v42  ;;  %v923_v38 = vshrl.u32 %v922_v37, 7  ;;  %v920_v41 = vld [vmem:[%s1321_s2] sm:$0xff]  ;;  %s1244_s2 = smov [#allocation8]  }
 0x13c   :  { %782 = vmatprep.subr.mxu0 %v617_v43  ;;  %853 = vmatprep.subr.mxu1 %v619_v44  ;;  %s984_s22 = sshll.u32 %s1244_s2, 4  ;;  %s985_s22 = int_to_ptr.vmem [resolvable:$true] %s984_s22 }
 0x13d   :  { %783 = vmatpush1.msra.mxu0 %v616_v45  ;;  %854 = vmatpush1.msra.mxu1 %v618_v46  ;;  %v924_v39 = vsub.s32 0, %v923_v38  ;;  %v932_v40 = vsub.s32 2, %v923_v38  ;;  %v928_v42 = vsub.s32 1, %v923_v38  ;;  %v936_v43 = vsub.s32 3, %v923_v38  ;;  %s1209_s23 = scalar_lea.vmem %s985_s22, 1024  ;;  %p1214_p2 = scmp.lt.s32.totalorder %s985_s22, %s985_s22 }
 0x13e   :  { %784 = vmatprep.subr.mxu0 %v609_v47  ;;  %855 = vmatprep.subr.mxu1 %v611_v48  ;;  %p1210_p1 = scmp.ne.s32.totalorder %s985_s22, %s1209_s23  ;;  %p1215_p3 = scmp.lt.s32.totalorder %s1209_s23, %s1209_s23 }
 0x13f   :  { %785 = vmatpush1.msra.mxu0 %v608_v49  ;;  %856 = vmatpush1.msra.mxu1 %v610_v50  ;;  %v925_v44 = vrot.slane %v920_v41, %v924_v39  ;;  %v933_v45 = vrot.slane %v920_v41, %v932_v40  ;;  %v929_v46 = vrot.slane %v920_v41, %v928_v42 }
 0x140   :  { %786 = vmatprep.subr.mxu0 %v601_v51  ;;  %857 = vmatprep.subr.mxu1 %v603_v52  ;;  %v937_v47 = vrot.slane %v920_v41, %v936_v43  ;;  %p1216_p4 = por %p1215_p3, %p1214_p2 }
 0x141   :  { %787 = vmatpush1.msra.mxu0 %v600_v53  ;;  %858 = vmatpush1.msra.mxu1 %v602_v54  ;;  %v940_v54 = vsub.s32 4, %v923_v38 }
 0x142   :  { %788 = vmatprep.subr.mxu0 %v593_v55  ;;  %859 = vmatprep.subr.mxu1 %v595_v56  ;;  %v948_v55 = vsub.s32 6, %v923_v38  ;;  %v944_v56 = vsub.s32 5, %v923_v38  ;;  %p1217_p5 = pnand %p1216_p4, %p1210_p1 }
 0x143   :  { %789 = vmatpush1.msra.mxu0 %v592_v57  ;;  %860 = vmatpush1.msra.mxu1 %v594_v58  ;;  %v952_v57 = vsub.s32 7, %v923_v38  ;;  %v941_v58 = vrot.slane %v920_v41, %v940_v54 }
 0x144   :  { %790 = vmatprep.subr.mxu0 %v585_v59  ;;  %861 = vmatprep.subr.mxu1 %v587_v60  ;;  %v949_v59 = vrot.slane %v920_v41, %v948_v55  ;;  %v945_v60 = vrot.slane %v920_v41, %v944_v56 }
 0x145   :  { %791 = vmatpush1.msra.mxu0 %v584_v61  ;;  %862 = vmatpush1.msra.mxu1 %v586_v62  ;;  %v953_v61 = vrot.slane %v920_v41, %v952_v57 }
 0x146   :  { %792 = vmatprep.subr.mxu0 %v577_v63  ;;  %863 = vmatprep.subr.mxu1 %v579_v0 }
 0x147   :  { %793 = vmatpush1.msra.mxu0 %v576_v1  ;;  %864 = vmatpush1.msra.mxu1 %v578_v2 }
 0x148   :  { %794 = vmatprep.subr.mxu0 %v569_v3  ;;  %865 = vmatprep.subr.mxu1 %v571_v4 }
 0x149   :  { %795 = vmatpush1.msra.mxu0 %v568_v5  ;;  %866 = vmatpush1.msra.mxu1 %v570_v6 }
 0x14a   :  { %796 = vmatprep.subr.mxu0 %v561_v7  ;;  %867 = vmatprep.subr.mxu1 %v563_v8 }
 0x14b   :  { %797 = vmatpush1.msra.mxu0 %v560_v9  ;;  %868 = vmatpush1.msra.mxu1 %v562_v10 }
 0x14c   :  { %798 = vmatprep.subr.mxu0 %v553_v11  ;;  %869 = vmatprep.subr.mxu1 %v555_v12 }
 0x14d   :  { %799 = vmatpush1.msra.mxu0 %v552_v14  ;;  %870 = vmatpush1.msra.mxu1 %v554_v15 }
 0x14e   :  { %800 = vmatprep.subr.mxu0 %v545_v16  ;;  %871 = vmatprep.subr.mxu1 %v547_v17 }
 0x14f   :  { %801 = vmatpush1.msra.mxu0 %v544_v18  ;;  %872 = vmatpush1.msra.mxu1 %v546_v19 }
 0x150   :  { %802 = vmatprep.subr.mxu0 %v537_v20  ;;  %873 = vmatprep.subr.mxu1 %v539_v21 }
 0x151   :  { %803 = vmatpush1.msra.mxu0 %v536_v22  ;;  %874 = vmatpush1.msra.mxu1 %v538_v23 }
 0x152   :  { %804 = vmatprep.subr.mxu0 %v529_v24  ;;  %875 = vmatprep.subr.mxu1 %v531_v25 }
 0x153   :  { %805 = vmatpush1.msra.mxu0 %v528_v26  ;;  %876 = vmatpush1.msra.mxu1 %v530_v27 }
 0x154   :  { %806 = vmatprep.subr.mxu0 %v521_v28  ;;  %877 = vmatprep.subr.mxu1 %v523_v29 }
 0x155   :  { %807 = vmatpush1.msra.mxu0 %v520_v30  ;;  %878 = vmatpush1.msra.mxu1 %v522_v31 }
 0x156   :  { %808 = vmatprep.subr.mxu0 %v513_v32  ;;  %879 = vmatprep.subr.mxu1 %v515_v33 }
 0x157   :  { %809 = vmatpush1.msra.mxu0 %v512_v34  ;;  %842 = vmatprep.mubr.f32.mxu0 %v1243_v13 }
 0x158   :  { %880 = vmatpush1.msra.mxu1 %v514_v35  ;;  %913 = vmatprep.mubr.f32.mxu1 %v1243_v13 }
 0x159   :  { %843 = vmatmul.mubr.f32.vlgmr.msra.gmra.mxu0 %v1305_v36  ;;  %914 = vmatmul.mubr.f32.vlgmr.msra.gmra.mxu1 %v1305_v36 }
 0x1f8   :  { %v702_v48 = vpop.f32.mrf.mxu0  ;;  %v773_v13 = vpop.f32.mrf.mxu1 }
 0x1f9   :  { %v962_v49 = vadd.f32 %v925_v44, %v702_v48  ;;  %v964_v50 = vadd.f32 %v933_v45, %v773_v13 }
 0x1fa   :  { %v704_v51 = vpop.f32.mrf.mxu0  ;;  %v775_v36 = vpop.f32.mrf.mxu1 }
 0x1fb   :  { %970 = vst [vmem:[#allocation8] sm:$0xff] %v962_v49  ;;  %972 = vst [vmem:[#allocation8 + $0x10] sm:$0xff] %v964_v50  ;;  %v963_v52 = vadd.f32 %v929_v46, %v704_v51  ;;  %v965_v53 = vadd.f32 %v937_v47, %v775_v36 }
 0x1fd   :  { %971 = vst [vmem:[#allocation8 + $0x8] sm:$0xff] %v963_v52  ;;  %973 = vst [vmem:[#allocation8 + $0x18] sm:$0xff] %v965_v53 }
 0x219   :  { %v844_v62 = vpop.f32.mrf.mxu0  ;;  %v915_v63 = vpop.f32.mrf.mxu1 }
 0x21a   :  { %v966_v0 = vadd.f32 %v941_v58, %v844_v62  ;;  %v968_v1 = vadd.f32 %v949_v59, %v915_v63 }
 0x21b   :  { %v846_v2 = vpop.f32.mrf.mxu0  ;;  %v917_v3 = vpop.f32.mrf.mxu1 }
 0x21c   :  { %974 = vst [vmem:[#allocation8 + $0x20] sm:$0xff] %v966_v0  ;;  %976 = vst [vmem:[#allocation8 + $0x30] sm:$0xff] %v968_v1  ;;  %v967_v4 = vadd.f32 %v945_v60, %v846_v2  ;;  %v969_v5 = vadd.f32 %v953_v61, %v917_v3 }
 0x21e   :  { %975 = vst [vmem:[#allocation8 + $0x28] sm:$0xff] %v967_v4  ;;  %977 = vst [vmem:[#allocation8 + $0x38] sm:$0xff] %v969_v5 }
 0x21f   :  { %1220 = shalt.err (!%p1217_p5)
}
 0x220   :  { %987 = dma.vmem_to_hbm [thread:$0]  %s985_s22, 1024, %s1326_s7, [#allocation4]  }
 0x221   :  { %1233 = dma.done.wait [#allocation4], 1024  }
 0x222   :  { %1234 = vsyncadd [#allocation4], 4294966272 }
 0x223   :  { %991 = vsyncpa [#allocation3], 1 }
 0x224   :  { %992 = vsyncpa [#allocation6], 1 }
 0x225   :  { %993 = vsyncpa [#allocation4], 1 }

</bundles_post_ra>
